<compile_context>
chip_gen: v7x
topology: tpu7x:2x2x1
jax: 0.10.0
libtpu: 0.0.40
codegen_flags: <defaults>
</compile_context>

<pallas_src>
import functools

import jax
import jax.numpy as jnp
from jax.experimental import pallas as pl
from jax.experimental.pallas import tpu as pltpu


def _global_avg_pool_kernel(x_ref, o_ref, *, inv_hw):
    # x_ref: (R, H*W) lane-dense tile; o_ref: (R, 1) per-row means.
    s = jnp.sum(x_ref[...].astype(jnp.float32), axis=-1, keepdims=True)
    o_ref[...] = (s * inv_hw).astype(o_ref.dtype)


def _row_block(rows, k, itemsize, target_bytes):
    """Pick a row block: multiple of the sublane packing, tile ~target_bytes."""
    sub = 8 * max(1, 4 // itemsize)  # f32 -> 8, bf16 -> 16, int8/fp8 -> 32
    if rows <= sub:
        return rows                  # full dim is always a legal block extent
    r = (target_bytes // (k * itemsize)) // sub * sub
    return max(sub, min(int(r), rows))


def global_avg_pool_2d(x, *, row_block_bytes=2 * 1024 * 1024):
    """GlobalAvgPool2d: (N, C, H, W) -> (N, C), mean over spatial dims."""
    N, C, H, W = x.shape
    rows, k = N * C, H * W
    x2 = x.reshape(rows, k)          # lane-dense 2-D view

    r = _row_block(rows, k, x.dtype.itemsize, row_block_bytes)
    grid = (pl.cdiv(rows, r),)

    kernel = functools.partial(_global_avg_pool_kernel, inv_hw=1.0 / float(k))

    out2 = pl.pallas_call(
        kernel,
        out_shape=jax.ShapeDtypeStruct((rows, 1), x.dtype),
        grid_spec=pl.GridSpec(
            grid=grid,
            in_specs=[pl.BlockSpec((r, k), lambda i: (i, 0))],
            out_specs=pl.BlockSpec((r, 1), lambda i: (i, 0)),
        ),
        compiler_params=pltpu.CompilerParams(
            dimension_semantics=("parallel",),      # no reduction across grid
            vmem_limit_bytes=32 * 1024 * 1024,      # safe on v5e/v6e/v7x
        ),
    )(x2)
    return out2.reshape(N, C)


if __name__ == "__main__":
    key = jax.random.PRNGKey(0)

    # Shapes implied by the module: NCHW input, pooled to (N, C).
    N, C, H, W = 2, 4, 16, 16
    x = jax.random.normal(key, (N, C, H, W), dtype=jnp.float32)

    out = global_avg_pool_2d(x)
    out = jax.block_until_ready(out)

    ref = jnp.mean(x, axis=(2, 3))   # == adaptive_avg_pool2d(x, 1).view(N, -1)
    assert out.shape == (N, C)
    assert jnp.allclose(out, ref, atol=1e-6, rtol=1e-6)

    # Extra check: ragged shape + tiny row-block budget to force multiple
    # row blocks with a remainder (exercises masked writeback path).
    x2 = jax.random.normal(jax.random.PRNGKey(1), (3, 5, 7, 9), dtype=jnp.float32)
    out2 = jax.block_until_ready(global_avg_pool_2d(x2, row_block_bytes=2048))
    ref2 = jnp.mean(x2, axis=(2, 3))
    assert out2.shape == (3, 5)
    assert jnp.allclose(out2, ref2, atol=1e-6, rtol=1e-6)

    print("KERNEL_OK")
</pallas_src>

<mosaic_0001>
module attributes {stable_mosaic.version = 11 : i64} {
  func.func @_global_avg_pool_kernel(%arg0: i32, %arg1: memref<8x256xf32, #tpu.memory_space<vmem>>, %arg2: memref<8x1xf32, #tpu.memory_space<vmem>>) attributes {dimension_semantics = [#tpu.dimension_semantics<parallel>], iteration_bounds = array<i64: 1>, scalar_prefetch = 0 : i64, scratch_operands = 0 : i64, tpu.core_type = #tpu.core_type<tc>, window_params = [{transform_indices = @transform_0, window_bounds = array<i64: 8, 256>}, {transform_indices = @transform_1, window_bounds = array<i64: 8, 1>}]} {
    %c0 = arith.constant 0 : index
    %c0_0 = arith.constant 0 : index
    %0 = vector.load %arg1[%c0, %c0_0] : memref<8x256xf32, #tpu.memory_space<vmem>>, vector<8x256xf32>
    %cst = arith.constant dense<0.000000e+00> : vector<8xf32>
    %1 = vector.multi_reduction <add>, %0, %cst [1] : vector<8x256xf32> to vector<8xf32>
    %2 = vector.shape_cast %1 : vector<8xf32> to vector<8x1xf32>
    %cst_1 = arith.constant 3.906250e-03 : f32
    %3 = vector.broadcast %cst_1 : f32 to vector<8x1xf32>
    %4 = arith.mulf %2, %3 : vector<8x1xf32>
    %c0_2 = arith.constant 0 : index
    %c0_3 = arith.constant 0 : index
    %5 = vector.load %arg2[%c0_2, %c0_3] : memref<8x1xf32, #tpu.memory_space<vmem>>, vector<8x1xf32>
    tpu.vector_store %arg2[%c0_2, %c0_3], %4 {strides = array<i32>} : memref<8x1xf32, #tpu.memory_space<vmem>>, vector<8x1xf32>,
    return
  }
  func.func @transform_0(%arg0: i32) -> (i32, i32) {
    %c0_i32 = arith.constant 0 : i32
    %c0_i32_0 = arith.constant 0 : i32
    return %arg0, %c0_i32 : i32, i32
  }
  func.func @transform_1(%arg0: i32) -> (i32, i32) {
    %c0_i32 = arith.constant 0 : i32
    %c0_i32_0 = arith.constant 0 : i32
    return %arg0, %c0_i32 : i32, i32
  }
}

</mosaic_0001>

<bundles_post_ra>
// kernel: tpu_custom_call.1
= control target key start
LH: loop header
LB: loop body
LE: loop exit
PB: predicated region body
PF: predicated region fallthrough
CT: control target
= control target key end

     0   :  { %6 = vsyncpa [#allocation3], 0  ;;  %s58_s6 = smov [#allocation2]   ;;  %s84_s0 = inlined_call_operand.hbm [shape: f32[8,256], index: 0, kind: input, shape index: {}]   ;;  %s85_s1 = inlined_call_operand.vmem [shape: f32[8,1], index: 1, kind: output, shape index: {}]  }
   0x1   :  { %s13_s7 = sshll.u32 %s58_s6, 4  ;;  %s34_s10 = scalar_lea.hbm %s84_s0, 256  ;;  %s14_s7 = int_to_ptr.vmem [resolvable:$true] %s13_s7 }
   0x2   :  { %p35_p0 = scmp.ne.s32.totalorder %s84_s0, %s34_s10  ;;  %p38_p1 = scmp.lt.u32.totalorder %s34_s10, %s84_s0 }
   0x4   :  { %p40_p2 = pnand %p38_p1, %p35_p0 }
   0x6   :  { %43 = shalt.err (!%p40_p2)
}
   0x7   :  { %s44_s15 = scalar_lea.vmem %s14_s7, 256  ;;  %p49_p4 = scmp.lt.s32.totalorder %s14_s7, %s14_s7 }
   0x8   :  { %p45_p3 = scmp.ne.s32.totalorder %s14_s7, %s44_s15  ;;  %p50_p5 = scmp.lt.s32.totalorder %s44_s15, %s44_s15 }
   0xa   :  { %p51_p6 = por %p50_p5, %p49_p4 }
   0xc   :  { %p52_p7 = pnand %p51_p6, %p45_p3 }
   0xe   :  { %55 = shalt.err (!%p52_p7)
}
   0xf   :  { %16 = dma.hbm_to_vmem [thread:$0]  %s84_s0, 256, %s14_s7, [#allocation3]  }
  0x10   :  { %56 = dma.done.wait [#allocation3], 256  }
  0x11   :  { %57 = vsyncadd [#allocation3], 4294967040  ;;  %v20_v0 = vld [vmem:[#allocation2] sm:$0xff]  ;;  %v21_v1 = vld [vmem:[#allocation2 + $0x8] sm:$0xff]  ;;  %vm26_vm0 = vcmask 7168  }
  0x12   :  { %v22_v2 = vadd.f32 %v21_v1, %v20_v0 }
  0x14   :  { %23 = vadd.xlane.f32.xlu0 %v22_v2 }
  0xa1   :  { %v24_v3 = vpop.xlane.xlu0 %23 }
  0xa2   :  { %v25_v4 = vmul.f32 0.00390625, %v24_v3 }
  0xa4   :  { %27 = vst.msk [vmem:[%s85_s1] sm:$0xff] %vm26_vm0, %v25_v4 }
  0xa5   :  { %32 = vsyncpa [#allocation3], 1 }

</bundles_post_ra>
